<compile_context>
chip_gen: v7x
topology: tpu7x:2x2x1
jax: 0.10.0
libtpu: 0.0.40
codegen_flags: <defaults>
</compile_context>

<pallas_src>
import random

import numpy as np

import jax
import jax.numpy as jnp
from jax.experimental import pallas as pl
from jax.experimental.pallas import tpu as pltpu


# ----------------------------------------------------------------------------
# helpers
# ----------------------------------------------------------------------------
def round_up(x, m):
    return ((x + m - 1) // m) * m


def _pad2(a, rows, cols):
    out = np.zeros((rows, cols), np.float32)
    a = np.asarray(a, np.float32)
    out[: a.shape[0], : a.shape[1]] = a
    return out


def _gate_major_cols(w_seg, H, H_pad):
    """(k, 3H) torch gate order r,z,n -> (k, 3*H_pad), each gate padded to H_pad lanes."""
    w_seg = np.asarray(w_seg, np.float32)
    out = np.zeros((w_seg.shape[0], 3 * H_pad), np.float32)
    for g in range(3):
        out[:, g * H_pad : g * H_pad + H] = w_seg[:, g * H : (g + 1) * H]
    return out


def _place_rows(segs, offsets, k_pad, n_cols):
    """Place row-segments at padded row offsets; columns land at [0:seg_cols]."""
    out = np.zeros((k_pad, n_cols), np.float32)
    for seg, off in zip(segs, offsets):
        seg = np.asarray(seg, np.float32)
        out[off : off + seg.shape[0], : seg.shape[1]] = seg
    return out


# ----------------------------------------------------------------------------
# Encoder kernel: relu(relu(feat @ W_stub) @ W_enc)   (resnet stub + Encoder.embedding)
# ----------------------------------------------------------------------------
def encoder_kernel(feat_ref, wstub_ref, wenc_ref, ctx_ref):
    f = jnp.maximum(
        jnp.dot(feat_ref[...].astype(jnp.bfloat16), wstub_ref[...],
                preferred_element_type=jnp.float32), 0.0)
    ctx_ref[...] = jnp.maximum(
        jnp.dot(f.astype(jnp.bfloat16), wenc_ref[...],
                preferred_element_type=jnp.float32), 0.0)


def encoder_forward(params, img):
    d = params["dims"]
    B = img.shape[0]
    B_pad = round_up(B, 8)
    feat = jnp.mean(img, axis=(2, 3))                                   # (B, C) global avg pool
    feat = jnp.pad(feat, ((0, B_pad - B), (0, d["C_pad"] - d["C"])))    # (B_pad, C_pad)
    ctx = pl.pallas_call(
        encoder_kernel,
        out_shape=jax.ShapeDtypeStruct((B_pad, d["Ec_pad"]), jnp.float32),
        in_specs=[pl.BlockSpec((B_pad, d["C_pad"]), lambda: (0, 0)),
                  pl.BlockSpec(params["w_stub"].shape, lambda: (0, 0)),
                  pl.BlockSpec(params["w_enc"].shape, lambda: (0, 0))],
        out_specs=pl.BlockSpec((B_pad, d["Ec_pad"]), lambda: (0, 0)),
    )(feat.astype(jnp.float32), params["w_stub"], params["w_enc"])
    return ctx                                                          # padded rows/cols are 0


# ----------------------------------------------------------------------------
# Fused decoder: all T-1 GRU steps + FC head + greedy feedback in one pallas_call.
# ----------------------------------------------------------------------------
def decoder_forward(params, context, targ, tf_sched):
    d = params["dims"]
    T, B = targ.shape
    n_steps = T - 1
    B_pad = context.shape[0]
    V, V_p = d["V"], d["V_pad"]
    De_p, Ec_p, H_p = d["De_pad"], d["Ec_pad"], d["H_pad"]
    K_all = De_p + Ec_p + H_p          # activation slab width: [emb | ctx | h]
    E0, C0, H0 = 0, De_p, De_p + Ec_p  # segment offsets inside the slab

    # Forced token ids for step i (= targ[i]), padded to B_pad and flattened so the
    # SMEM footprint is tiny (1-D scalar-prefetch array; no one-hot HBM stream).
    tok_ids = jnp.pad(targ[:n_steps].astype(jnp.int32),
                      ((0, 0), (0, B_pad - B))).reshape(-1)             # (n_steps * B_pad,)

    def kernel(tf_ref, tok_ref,                              # SMEM scalar-prefetch
               ctx_ref, emb_ref, wg_ref, bg_ref, whn_ref, bhn_ref, wfc_ref, bfc_ref,
               out_ref, x_s):
        i = pl.program_id(0)
        last = pl.num_programs(0) - 1

        @pl.when(i == 0)
        def _():
            x_s[:, C0:H0] = ctx_ref[...]                     # context, resident for all steps
            x_s[:, H0:] = ctx_ref[...]                       # hidden_0 = context (Ec == H)

        # Teacher-forced token: gather rows of the resident table by SMEM ids.
        # (Non-forced steps already had their greedy embedding written at the end
        #  of the previous step.)  Dropout = identity (eval mode).
        @pl.when(tf_ref[i] > 0)
        def _():
            base = i * B_pad
            for b in range(B_pad):
                tok = tok_ref[base + b]
                x_s[b:b + 1, E0:C0] = emb_ref[pl.ds(tok, 1), :]

        # --- GRU step (PyTorch gate order r, z, n; gate-major, lane-aligned) ----
        h = x_s[:, H0:]                                      # previous hidden (f32)
        xv = x_s[...].astype(jnp.bfloat16)                   # slab [emb | ctx | h_prev]
        # merged dot: [gi_r+gh_r | gi_z+gh_z | gi_n] (+ pre-merged biases)
        g = jnp.dot(xv, wg_ref[...], preferred_element_type=jnp.float32) + bg_ref[...]
        ghn = jnp.dot(h.astype(jnp.bfloat16), whn_ref[...],
                      preferred_element_type=jnp.float32) + bhn_ref[...]
        r = jax.nn.sigmoid(g[:, :H_p])
        z = jax.nn.sigmoid(g[:, H_p:2 * H_p])
        n = jnp.tanh(g[:, 2 * H_p:] + r * ghn)
        h_new = (1.0 - z) * n + z * h
        x_s[:, H0:] = h_new

        # FC head over cat(emb, hidden, ctx) -> one merged dot against the slab.
        pred = jnp.dot(x_s[...].astype(jnp.bfloat16), wfc_ref[...],
                       preferred_element_type=jnp.float32) + bfc_ref[...]
        out_ref[0] = pred

        # Greedy feedback for step i+1, only when that step is NOT teacher-forced:
        # first-max argmax (padded lanes masked), then write its embedding straight
        # into the slab's emb slot.  No full-V scratch, no extra full-V store/load.
        nxt = jnp.minimum(i + 1, last)

        @pl.when(jnp.logical_and(i < last, tf_ref[nxt] == 0))
        def _():
            col = jax.lax.broadcasted_iota(jnp.int32, (1, V_p), 1)
            masked = jnp.where(col < V, pred, -jnp.inf)
            row_max = jnp.max(masked, axis=-1, keepdims=True)
            top1 = jnp.min(jnp.where(masked == row_max, col, V_p),
                           axis=-1, keepdims=True)           # (B_pad, 1) first-max index
            oh = (col == top1).astype(jnp.float32)            # (B_pad, V_p)
            x_s[:, E0:C0] = jnp.dot(oh, emb_ref[...],
                                    preferred_element_type=jnp.float32)

    # Keep the resident FC head / table in scoped VMEM even at moderate vocab
    # (v6e/v5e feedback); capped well under physical limits.  No-op at demo size.
    resident = sum(int(a.size) * a.dtype.itemsize for a in
                   (params["emb_table"], params["w_gru"], params["b_gru"],
                    params["w_hhn"], params["b_hhn"], params["w_fc"],
                    params["b_fc"], context))
    vmem_limit = int(min(100 << 20, max(32 << 20, 2 * resident + (8 << 20))))

    grid_spec = pltpu.PrefetchScalarGridSpec(
        num_scalar_prefetch=2,
        grid=(n_steps,),
        in_specs=[
            pl.BlockSpec((B_pad, Ec_p),    lambda i, tf, tok: (0, 0)),  # context   (resident)
            pl.BlockSpec((V_p, De_p),      lambda i, tf, tok: (0, 0)),  # emb table (resident, f32)
            pl.BlockSpec((K_all, 3 * H_p), lambda i, tf, tok: (0, 0)),  # merged GRU weight
            pl.BlockSpec((1, 3 * H_p),     lambda i, tf, tok: (0, 0)),  # merged GRU bias
            pl.BlockSpec((H_p, H_p),       lambda i, tf, tok: (0, 0)),  # W_hh n-gate
            pl.BlockSpec((1, H_p),         lambda i, tf, tok: (0, 0)),  # b_hh n-gate
            pl.BlockSpec((K_all, V_p),     lambda i, tf, tok: (0, 0)),  # W_fc (merged, resident)
            pl.BlockSpec((1, V_p),         lambda i, tf, tok: (0, 0)),  # b_fc
        ],
        out_specs=pl.BlockSpec((1, B_pad, V_p), lambda i, tf, tok: (i, 0, 0)),
        scratch_shapes=[pltpu.VMEM((B_pad, K_all), jnp.float32)],       # [emb | ctx | h] slab
    )
    out = pl.pallas_call(
        kernel,
        out_shape=jax.ShapeDtypeStruct((n_steps, B_pad, V_p), jnp.float32),
        grid_spec=grid_spec,
        compiler_params=pltpu.CompilerParams(
            dimension_semantics=("arbitrary",),
            vmem_limit_bytes=vmem_limit),
    )(tf_sched, tok_ids, context, params["emb_table"],
      params["w_gru"], params["b_gru"], params["w_hhn"], params["b_hhn"],
      params["w_fc"], params["b_fc"])
    return out                                                          # (T-1, B_pad, V_pad)


# ----------------------------------------------------------------------------
# Parameter construction (mirrors the PyTorch module shapes, then pads to lanes)
# ----------------------------------------------------------------------------
def init_params(key, vocab_size, enc_embed, dec_embed, hidden, img_channels=3):
    assert enc_embed == hidden, "context initializes the GRU hidden => enc_embed must equal hidden"
    ks = jax.random.split(key, 9)

    def u(k, shape, fan_in):
        bound = 1.0 / np.sqrt(float(fan_in))
        return np.asarray(jax.random.uniform(k, shape, jnp.float32, -bound, bound))

    De, Ec, H, V, C = dec_embed, enc_embed, hidden, vocab_size, img_channels
    De_p, Ec_p, H_p, V_p, C_p = (round_up(x, 128) for x in (De, Ec, H, V, C))
    K_all = De_p + Ec_p + H_p
    H0 = De_p + Ec_p

    emb_table = np.asarray(jax.random.normal(ks[0], (V, De), jnp.float32))  # nn.Embedding
    w_ih = u(ks[1], (3 * H, De + Ec), H)                                    # GRU weight_ih_l0
    w_hh = u(ks[2], (3 * H, H), H)                                          # GRU weight_hh_l0
    b_ih = u(ks[3], (3 * H,), H)
    b_hh = u(ks[4], (3 * H,), H)
    w_fc = u(ks[5], (V, De + H + Ec), H + De + Ec)                          # nn.Linear (cat: emb,h,ctx)
    b_fc = u(ks[6], (V,), H + De + Ec)
    w_enc = u(ks[7], (Ec, 2048), 2048)                                      # Encoder.embedding (no bias)
    w_stub = u(ks[8], (C, 2048), C)                                         # resnet50 stub projection

    w_ih_t = w_ih.T                                                         # (De+Ec, 3H) gate-major r,z,n
    w_hh_t = w_hh.T                                                         # (H, 3H)

    # Merged GRU weight over the [emb | ctx | h] slab; W_hh's r/z gates are folded
    # into the h rows, the n-gate h-rows stay zero (gh_n handled by a small dot).
    w_gru = np.zeros((K_all, 3 * H_p), np.float32)
    w_gru[0:De, :] = _gate_major_cols(w_ih_t[:De], H, H_p)                  # emb rows
    w_gru[De_p:De_p + Ec, :] = _gate_major_cols(w_ih_t[De:], H, H_p)        # ctx rows
    w_gru[H0:H0 + H, 0:H] = w_hh_t[:, 0:H]                                  # h rows, r gate
    w_gru[H0:H0 + H, H_p:H_p + H] = w_hh_t[:, H:2 * H]                      # h rows, z gate

    b_merged = b_ih.copy()
    b_merged[:2 * H] += b_hh[:2 * H]                                        # r/z biases pre-merged
    b_gru = _gate_major_cols(b_merged[None, :], H, H_p)                     # (1, 3H_p)

    w_hhn = _pad2(w_hh_t[:, 2 * H:], H_p, H_p)                              # n-gate recurrent weight
    b_hhn = _pad2(b_hh[None, 2 * H:], 1, H_p)

    # FC weight, transposed rows ordered (emb, hidden, ctx); re-placed to slab order [emb|ctx|h]
    w_fc_t = w_fc.T                                                         # (De+H+Ec, V)
    w_fc_all = _place_rows(
        [w_fc_t[:De], w_fc_t[De + H:], w_fc_t[De:De + H]],
        [0, De_p, De_p + Ec_p], K_all, V_p)

    return {
        "emb_table": jnp.asarray(_pad2(emb_table, V_p, De_p), jnp.float32),  # f32: trivial row slicing
        "w_gru": jnp.asarray(w_gru, jnp.bfloat16),
        "b_gru": jnp.asarray(b_gru, jnp.float32),
        "w_hhn": jnp.asarray(w_hhn, jnp.bfloat16),
        "b_hhn": jnp.asarray(b_hhn, jnp.float32),
        "w_fc": jnp.asarray(w_fc_all, jnp.bfloat16),
        "b_fc": jnp.asarray(_pad2(b_fc[None, :], 1, V_p), jnp.float32),
        "w_enc": jnp.asarray(_pad2(w_enc.T, 2048, Ec_p), jnp.bfloat16),
        "w_stub": jnp.asarray(_pad2(w_stub, C_p, 2048), jnp.bfloat16),
        "dims": dict(V=V, De=De, Ec=Ec, H=H, C=C,
                     V_pad=V_p, De_pad=De_p, Ec_pad=Ec_p, H_pad=H_p, C_pad=C_p),
    }


# ----------------------------------------------------------------------------
# ImageCaption.forward
# ----------------------------------------------------------------------------
def image_caption_forward(params, img, targ, teacher_forcing_ratio=0.5, tf_seed=0):
    d = params["dims"]
    T, B = targ.shape
    assert img.shape[0] == B
    V = d["V"]

    context = encoder_forward(params, img)                   # (B_pad, Ec_pad) f32
    if T < 2:
        return jnp.zeros((T, B, V), jnp.float32)

    # Host-side teacher-forcing schedule (mirrors torch: one random draw per step t;
    # the draw at step t selects the token fed to step t+1; step 1 always uses
    # targ[0]; the final draw is made but never consumed, as in the reference).
    rng = random.Random(tf_seed)
    draws = [rng.random() < teacher_forcing_ratio for _ in range(T - 1)]
    tf_sched = jnp.asarray([1] + [int(x) for x in draws[:T - 2]], dtype=jnp.int32)

    steps = decoder_forward(params, context, targ, tf_sched)      # (T-1, B_pad, V_pad)
    outputs = jnp.zeros((T, B, V), jnp.float32).at[1:].set(steps[:, :B, :V])
    return outputs                                                 # (T, B, V); row 0 stays zero


if __name__ == "__main__":
    vocab_size, enc_embed, dec_embed, hidden = 64, 32, 16, 32      # enc_embed == hidden
    B, T, C, S = 2, 8, 3, 16

    params = init_params(jax.random.PRNGKey(0), vocab_size, enc_embed, dec_embed,
                         hidden, img_channels=C)
    k_img, k_targ = jax.random.split(jax.random.PRNGKey(1))
    img = jax.random.normal(k_img, (B, C, S, S), jnp.float32)      # NCHW
    targ = jax.random.randint(k_targ, (T, B), 0, vocab_size, jnp.int32)

    out = image_caption_forward(params, img, targ, teacher_forcing_ratio=0.5)
    out = jax.block_until_ready(out)
    assert out.shape == (T, B, vocab_size) and out.dtype == jnp.float32
    assert bool(jnp.all(jnp.isfinite(out)))
    print("KERNEL_OK")
</pallas_src>

<mosaic_0001>
module attributes {stable_mosaic.version = 11 : i64} {
  func.func @encoder_kernel(%arg0: memref<8x128xf32, #tpu.memory_space<vmem>>, %arg1: memref<128x2048xbf16, #tpu.memory_space<vmem>>, %arg2: memref<2048x128xbf16, #tpu.memory_space<vmem>>, %arg3: memref<8x128xf32, #tpu.memory_space<vmem>>) attributes {dimension_semantics = [], scalar_prefetch = 0 : i64, scratch_operands = 0 : i64, tpu.core_type = #tpu.core_type<tc>} {
    %c0 = arith.constant 0 : index
    %c0_0 = arith.constant 0 : index
    %0 = vector.load %arg0[%c0, %c0_0] : memref<8x128xf32, #tpu.memory_space<vmem>>, vector<8x128xf32>
    %1 = arith.truncf %0 : vector<8x128xf32> to vector<8x128xbf16>
    %c0_1 = arith.constant 0 : index
    %c0_2 = arith.constant 0 : index
    %2 = vector.load %arg1[%c0_1, %c0_2] : memref<128x2048xbf16, #tpu.memory_space<vmem>>, vector<128x2048xbf16>
    %cst = arith.constant dense<0.000000e+00> : vector<8x2048xf32>
    %3 = tpu.matmul %1, %2, %cst {dimension_numbers = #tpu.dot_dimension_numbers<[1], [0], [0], [1], [0, 0, 1, 1], [], []>} : vector<8x128xbf16>, vector<128x2048xbf16>, vector<8x2048xf32> -> vector<8x2048xf32>
    %cst_3 = arith.constant 0.000000e+00 : f32
    %4 = vector.broadcast %cst_3 : f32 to vector<8x2048xf32>
    %5 = arith.maximumf %3, %4 : vector<8x2048xf32>
    %6 = arith.truncf %5 : vector<8x2048xf32> to vector<8x2048xbf16>
    %c0_4 = arith.constant 0 : index
    %c0_5 = arith.constant 0 : index
    %7 = vector.load %arg2[%c0_4, %c0_5] : memref<2048x128xbf16, #tpu.memory_space<vmem>>, vector<2048x128xbf16>
    %cst_6 = arith.constant dense<0.000000e+00> : vector<8x128xf32>
    %8 = tpu.matmul %6, %7, %cst_6 {dimension_numbers = #tpu.dot_dimension_numbers<[1], [0], [0], [1], [0, 0, 1, 1], [], []>} : vector<8x2048xbf16>, vector<2048x128xbf16>, vector<8x128xf32> -> vector<8x128xf32>
    %cst_7 = arith.constant 0.000000e+00 : f32
    %9 = vector.broadcast %cst_7 : f32 to vector<8x128xf32>
    %10 = arith.maximumf %8, %9 : vector<8x128xf32>
    %c0_8 = arith.constant 0 : index
    %c0_9 = arith.constant 0 : index
    %11 = vector.load %arg3[%c0_8, %c0_9] : memref<8x128xf32, #tpu.memory_space<vmem>>, vector<8x128xf32>
    tpu.vector_store %arg3[%c0_8, %c0_9], %10 {strides = array<i32>} : memref<8x128xf32, #tpu.memory_space<vmem>>, vector<8x128xf32>,
    return
  }
}

</mosaic_0001>

<bundles_post_ra>
// kernel: tpu_custom_call.1
= control target key start
LH: loop header
LB: loop body
LE: loop exit
PB: predicated region body
PF: predicated region fallthrough
CT: control target
= control target key end

     0   :  { %8 = vsyncpa [#allocation3], 0  ;;  %s3306_s0 = inlined_call_operand.hbm [shape: f32[8,128], index: 0, kind: input, shape index: {}]   ;;  %s3307_s1 = inlined_call_operand.hbm [shape: bf16[128,2048], index: 1, kind: input, shape index: {}]   ;;  %s3308_s2 = inlined_call_operand.hbm [shape: bf16[2048,128], index: 2, kind: input, shape index: {}]   ;;  %s3309_s3 = inlined_call_operand.hbm [shape: f32[8,128], index: 3, kind: output, shape index: {}]  }
   0x1   :  { %9 = vsyncpa [#allocation6], 0 }
   0x2   :  { %10 = vsyncpa [#allocation4], 0  ;;  %s3209_s12 = smov [#allocation5]   ;;  %s3115_s16 = scalar_lea.hbm %s3307_s1, 16384 }
   0x3   :  { %s26_s13 = sshll.u32 %s3209_s12, 4  ;;  %p3116_p0 = scmp.ne.s32.totalorder %s3307_s1, %s3115_s16  ;;  %s27_s13 = int_to_ptr.vmem [resolvable:$true] %s26_s13 }
   0x4   :  { %p3119_p1 = scmp.lt.u32.totalorder %s3115_s16, %s3307_s1 }
   0x6   :  { %p3121_p2 = pnand %p3119_p1, %p3116_p0 }
   0x8   :  { %3124 = shalt.err (!%p3121_p2)
}
   0x9   :  { %s3125_s21 = scalar_lea.vmem %s27_s13, 16384  ;;  %p3130_p4 = scmp.lt.s32.totalorder %s27_s13, %s27_s13 }
   0xa   :  { %p3126_p3 = scmp.ne.s32.totalorder %s27_s13, %s3125_s21  ;;  %p3131_p5 = scmp.lt.s32.totalorder %s3125_s21, %s3125_s21 }
   0xc   :  { %p3132_p6 = por %p3131_p5, %p3130_p4 }
   0xe   :  { %p3133_p7 = pnand %p3132_p6, %p3126_p3 }
  0x10   :  { %3136 = shalt.err (!%p3133_p7)
}
  0x11   :  { %s3210_s22 = smov 1024   ;;  %s3211_s23 = smov 64  }
  0x12   :  { %32 = dma.hbm_to_vmem [thread:$0]  %s3307_s1, 16384, %s27_s13, [#allocation6], %s3210_s22, %s3210_s22, %s3211_s23  }
  0x13   :  { %s3212_s26 = smov [#allocation2]   ;;  %s3213_s28 = smov [#allocation7]  }
  0x14   :  { %s17_s27 = sshll.u32 %s3212_s26, 4  ;;  %s38_s29 = sshll.u32 %s3213_s28, 4  ;;  %s18_s27 = int_to_ptr.vmem [resolvable:$true] %s17_s27  ;;  %s39_s29 = int_to_ptr.vmem [resolvable:$true] %s38_s29 }
  0x15   :  { %s3137_s5 = scalar_lea.hbm %s3306_s0, 128 }
  0x16   :  { %p3138_p8 = scmp.ne.s32.totalorder %s3306_s0, %s3137_s5  ;;  %p3141_p9 = scmp.lt.u32.totalorder %s3137_s5, %s3306_s0 }
  0x18   :  { %p3143_p10 = pnand %p3141_p9, %p3138_p8 }
  0x1a   :  { %3146 = shalt.err (!%p3143_p10)
}
  0x1b   :  { %s3147_s1 = scalar_lea.vmem %s18_s27, 128  ;;  %p3152_p12 = scmp.lt.s32.totalorder %s18_s27, %s18_s27 }
  0x1c   :  { %p3148_p11 = scmp.ne.s32.totalorder %s18_s27, %s3147_s1  ;;  %p3153_p13 = scmp.lt.s32.totalorder %s3147_s1, %s3147_s1 }
  0x1e   :  { %p3154_p0 = por %p3153_p13, %p3152_p12 }
  0x20   :  { %p3155_p1 = pnand %p3154_p0, %p3148_p11 }
  0x22   :  { %3158 = shalt.err (!%p3155_p1)
}
  0x23   :  { %20 = dma.hbm_to_vmem [thread:$0]  %s3306_s0, 128, %s18_s27, [#allocation3]  }
  0x24   :  { %s3159_s14 = scalar_lea.hbm %s3308_s2, 16384 }
  0x25   :  { %p3160_p2 = scmp.ne.s32.totalorder %s3308_s2, %s3159_s14  ;;  %p3163_p3 = scmp.lt.u32.totalorder %s3159_s14, %s3308_s2 }
  0x27   :  { %p3165_p4 = pnand %p3163_p3, %p3160_p2 }
  0x29   :  { %3168 = shalt.err (!%p3165_p4)
}
  0x2a   :  { %s3169_s19 = scalar_lea.vmem %s39_s29, 16384  ;;  %p3174_p6 = scmp.lt.s32.totalorder %s39_s29, %s39_s29 }
  0x2b   :  { %p3170_p5 = scmp.ne.s32.totalorder %s39_s29, %s3169_s19  ;;  %p3175_p7 = scmp.lt.s32.totalorder %s3169_s19, %s3169_s19 }
  0x2d   :  { %p3176_p8 = por %p3175_p7, %p3174_p6 }
  0x2f   :  { %p3177_p9 = pnand %p3176_p8, %p3170_p5 }
  0x31   :  { %3180 = shalt.err (!%p3177_p9)
}
  0x32   :  { %s3214_s0 = smov 4  }
  0x33   :  { %44 = dma.hbm_to_vmem [thread:$0]  %s3308_s2, 16384, %s39_s29, [#allocation6], %s3211_s23, %s3211_s23, %s3214_s0  }
  0x34   :  { %3203 = dma.done.wait [#allocation3], 128  }
  0x35   :  { %3204 = vsyncadd [#allocation3], 4294967168 }
  0x36   :  { %3205 = dma.done.wait [#allocation6], 32768  }
  0x37   :  { %3206 = vsyncadd [#allocation6], 4294934528  ;;  %v3215_v0 = vmov 0   ;;  %v57_v1 = vld [vmem:[#allocation5] sm:$0xff]  ;;  %v58_v3 = vld [vmem:[#allocation5 + $0x8] sm:$0xff]  ;;  %s3216_s2 = smov [#allocation8]  }
  0x38   :  { %857 = vmatprep.mubr.bf16.mxu0 %v3215_v0  ;;  %898 = vmatprep.mubr.bf16.mxu1 %v3215_v0  ;;  %v65_v2 = vld [vmem:[#allocation5 + $0x40] sm:$0xff]  ;;  %v66_v5 = vld [vmem:[#allocation5 + $0x48] sm:$0xff]  ;;  %v59_v63 = vld [vmem:[#allocation5 + $0x10] sm:$0xff]  ;;  %s2537_s22 = sshll.u32 %s3216_s2, 4  ;;  %s2538_s22 = int_to_ptr.vmem [resolvable:$true] %s2537_s22 }
  0x39   :  { %v2548_v4 = vcombine.high %v57_v1, %v65_v2  ;;  %v2547_v6 = vcombine.low %v57_v1, %v65_v2  ;;  %v73_v7 = vld [vmem:[#allocation5 + $0x80] sm:$0xff]  ;;  %v2550_v9 = vcombine.high %v58_v3, %v66_v5  ;;  %v2549_v10 = vcombine.low %v58_v3, %v66_v5  ;;  %v74_v12 = vld [vmem:[#allocation5 + $0x88] sm:$0xff]  ;;  %v67_v1 = vld [vmem:[#allocation5 + $0x50] sm:$0xff]  ;;  %s3181_s23 = scalar_lea.vmem %s2538_s22, 128  ;;  %p3186_p11 = scmp.lt.s32.totalorder %s2538_s22, %s2538_s22 }
  0x3a   :  { %v81_v8 = vld [vmem:[#allocation5 + $0xc0] sm:$0xff]  ;;  %v82_v13 = vld [vmem:[#allocation5 + $0xc8] sm:$0xff]  ;;  %v60_v2 = vld [vmem:[#allocation5 + $0x18] sm:$0xff]  ;;  %p3182_p10 = scmp.ne.s32.totalorder %s2538_s22, %s3181_s23  ;;  %p3187_p12 = scmp.lt.s32.totalorder %s3181_s23, %s3181_s23 }
  0x3b   :  { %v2564_v11 = vcombine.high %v73_v7, %v81_v8  ;;  %v89_v14 = vld [vmem:[#allocation5 + $0x100] sm:$0xff]  ;;  %825 = vmatprep.subr.bf16.mxu0 %v2548_v4  ;;  %v2566_v15 = vcombine.high %v74_v12, %v82_v13  ;;  %v90_v17 = vld [vmem:[#allocation5 + $0x108] sm:$0xff]  ;;  %866 = vmatprep.subr.bf16.mxu1 %v2550_v9  ;;  %v2563_v19 = vcombine.low %v73_v7, %v81_v8  ;;  %v68_v3 = vld [vmem:[#allocation5 + $0x58] sm:$0xff] }
  0x3c   :  { %v97_v16 = vld [vmem:[#allocation5 + $0x140] sm:$0xff]  ;;  %v98_v18 = vld [vmem:[#allocation5 + $0x148] sm:$0xff]  ;;  %826 = vmatpush1.bf16.msra.mxu0 %v2547_v6  ;;  %867 = vmatpush1.bf16.msra.mxu1 %v2549_v10  ;;  %v2565_v20 = vcombine.low %v74_v12, %v82_v13  ;;  %v55_v5 = vld [vmem:[#allocation2] sm:$0xff]  ;;  %v2552_v7 = vcombine.high %v59_v63, %v67_v1  ;;  %v2554_v8 = vcombine.high %v60_v2, %v68_v3  ;;  %p3188_p13 = por %p3187_p12, %p3186_p11 }
  0x3d   :  { %827 = vmatprep.subr.bf16.mxu0 %v2564_v11  ;;  %v2580_v21 = vcombine.high %v89_v14, %v97_v16  ;;  %868 = vmatprep.subr.bf16.mxu1 %v2566_v15  ;;  %v2582_v22 = vcombine.high %v90_v17, %v98_v18  ;;  %v105_v23 = vld [vmem:[#allocation5 + $0x180] sm:$0xff]  ;;  %v106_v25 = vld [vmem:[#allocation5 + $0x188] sm:$0xff]  ;;  %v2579_v27 = vcombine.low %v89_v14, %v97_v16  ;;  %v75_v9 = vld [vmem:[#allocation5 + $0x90] sm:$0xff] }
  0x3e   :  { %v113_v24 = vld [vmem:[#allocation5 + $0x1c0] sm:$0xff]  ;;  %v114_v26 = vld [vmem:[#allocation5 + $0x1c8] sm:$0xff]  ;;  %v2581_v28 = vcombine.low %v90_v17, %v98_v18  ;;  %v83_v10 = vld [vmem:[#allocation5 + $0xd0] sm:$0xff]  ;;  %v3278_v11 = vpack.c.bf16 %v55_v5, %v55_v5  ;;  %v2551_v14 = vcombine.low %v59_v63, %v67_v1  ;;  %v2553_v15 = vcombine.low %v60_v2, %v68_v3  ;;  %p3189_p0 = pnand %p3188_p13, %p3182_p10 }
  0x3f   :  { %v2596_v29 = vcombine.high %v105_v23, %v113_v24  ;;  %v2598_v30 = vcombine.high %v106_v25, %v114_v26  ;;  %v121_v31 = vld [vmem:[#allocation5 + $0x200] sm:$0xff]  ;;  %v122_v33 = vld [vmem:[#allocation5 + $0x208] sm:$0xff]  ;;  %v2595_v35 = vcombine.low %v105_v23, %v113_v24  ;;  %v2597_v36 = vcombine.low %v106_v25, %v114_v26  ;;  %v76_v12 = vld [vmem:[#allocation5 + $0x98] sm:$0xff] }
  0x40   :  { %828 = vmatpush1.bf16.msra.mxu0 %v2563_v19  ;;  %869 = vmatpush1.bf16.msra.mxu1 %v2565_v20  ;;  %v129_v32 = vld [vmem:[#allocation5 + $0x240] sm:$0xff]  ;;  %v130_v34 = vld [vmem:[#allocation5 + $0x248] sm:$0xff]  ;;  %v84_v13 = vld [vmem:[#allocation5 + $0xd8] sm:$0xff]  ;;  %v2568_v16 = vcombine.high %v75_v9, %v83_v10 }
  0x41   :  { %829 = vmatprep.subr.bf16.mxu0 %v2580_v21  ;;  %870 = vmatprep.subr.bf16.mxu1 %v2582_v22  ;;  %v2612_v37 = vcombine.high %v121_v31, %v129_v32  ;;  %v2614_v38 = vcombine.high %v122_v33, %v130_v34  ;;  %v137_v39 = vld [vmem:[#allocation5 + $0x280] sm:$0xff]  ;;  %v138_v41 = vld [vmem:[#allocation5 + $0x288] sm:$0xff]  ;;  %v2611_v43 = vcombine.low %v121_v31, %v129_v32  ;;  %v91_v18 = vld [vmem:[#allocation5 + $0x110] sm:$0xff] }
  0x42   :  { %v145_v40 = vld [vmem:[#allocation5 + $0x2c0] sm:$0xff]  ;;  %v146_v42 = vld [vmem:[#allocation5 + $0x2c8] sm:$0xff]  ;;  %v2613_v44 = vcombine.low %v122_v33, %v130_v34  ;;  %v2570_v17 = vcombine.high %v76_v12, %v84_v13  ;;  %v99_v19 = vld [vmem:[#allocation5 + $0x150] sm:$0xff]  ;;  %v2567_v22 = vcombine.low %v75_v9, %v83_v10  ;;  %v2569_v23 = vcombine.low %v76_v12, %v84_v13 }
  0x43   :  { %v2628_v45 = vcombine.high %v137_v39, %v145_v40  ;;  %v2630_v46 = vcombine.high %v138_v41, %v146_v42  ;;  %v153_v47 = vld [vmem:[#allocation5 + $0x300] sm:$0xff]  ;;  %v154_v49 = vld [vmem:[#allocation5 + $0x308] sm:$0xff]  ;;  %v2627_v51 = vcombine.low %v137_v39, %v145_v40  ;;  %v2629_v52 = vcombine.low %v138_v41, %v146_v42  ;;  %v92_v20 = vld [vmem:[#allocation5 + $0x118] sm:$0xff] }
  0x44   :  { %830 = vmatpush1.bf16.msra.mxu0 %v2579_v27  ;;  %871 = vmatpush1.bf16.msra.mxu1 %v2581_v28  ;;  %v161_v48 = vld [vmem:[#allocation5 + $0x340] sm:$0xff]  ;;  %v162_v50 = vld [vmem:[#allocation5 + $0x348] sm:$0xff]  ;;  %v100_v21 = vld [vmem:[#allocation5 + $0x158] sm:$0xff]  ;;  %v2584_v24 = vcombine.high %v91_v18, %v99_v19 }
  0x45   :  { %831 = vmatprep.subr.bf16.mxu0 %v2596_v29  ;;  %872 = vmatprep.subr.bf16.mxu1 %v2598_v30  ;;  %v2644_v53 = vcombine.high %v153_v47, %v161_v48  ;;  %v2646_v54 = vcombine.high %v154_v49, %v162_v50  ;;  %v169_v55 = vld [vmem:[#allocation5 + $0x380] sm:$0xff]  ;;  %v170_v57 = vld [vmem:[#allocation5 + $0x388] sm:$0xff]  ;;  %v2643_v59 = vcombine.low %v153_v47, %v161_v48  ;;  %v107_v26 = vld [vmem:[#allocation5 + $0x190] sm:$0xff] }
  0x46   :  { %v177_v56 = vld [vmem:[#allocation5 + $0x3c0] sm:$0xff]  ;;  %v178_v58 = vld [vmem:[#allocation5 + $0x3c8] sm:$0xff]  ;;  %v2645_v60 = vcombine.low %v154_v49, %v162_v50  ;;  %v2586_v25 = vcombine.high %v92_v20, %v100_v21  ;;  %v115_v27 = vld [vmem:[#allocation5 + $0x1d0] sm:$0xff]  ;;  %v2583_v30 = vcombine.low %v91_v18, %v99_v19  ;;  %v2585_v31 = vcombine.low %v92_v20, %v100_v21 }
  0x47   :  { %v2660_v61 = vcombine.high %v169_v55, %v177_v56  ;;  %v2662_v62 = vcombine.high %v170_v57, %v178_v58  ;;  %v2659_v4 = vcombine.low %v169_v55, %v177_v56  ;;  %v2661_v6 = vcombine.low %v170_v57, %v178_v58  ;;  %v108_v28 = vld [vmem:[#allocation5 + $0x198] sm:$0xff]  ;;  %v123_v34 = vld [vmem:[#allocation5 + $0x210] sm:$0xff]  ;;  %v61_v63 = vld [vmem:[#allocation5 + $0x20] sm:$0xff] }
  0x48   :  { %832 = vmatpush1.bf16.msra.mxu0 %v2595_v35  ;;  %873 = vmatpush1.bf16.msra.mxu1 %v2597_v36  ;;  %v116_v29 = vld [vmem:[#allocation5 + $0x1d8] sm:$0xff]  ;;  %v2600_v32 = vcombine.high %v107_v26, %v115_v27  ;;  %v131_v35 = vld [vmem:[#allocation5 + $0x250] sm:$0xff]  ;;  %v69_v3 = vld [vmem:[#allocation5 + $0x60] sm:$0xff] }
  0x49   :  { %833 = vmatprep.subr.bf16.mxu0 %v2612_v37  ;;  %874 = vmatprep.subr.bf16.mxu1 %v2614_v38  ;;  %v2602_v33 = vcombine.high %v108_v28, %v116_v29  ;;  %v124_v36 = vld [vmem:[#allocation5 + $0x218] sm:$0xff]  ;;  %v2599_v38 = vcombine.low %v107_v26, %v115_v27  ;;  %v139_v39 = vld [vmem:[#allocation5 + $0x290] sm:$0xff]  ;;  %v2601_v40 = vcombine.low %v108_v28, %v116_v29  ;;  %v62_v5 = vld [vmem:[#allocation5 + $0x28] sm:$0xff] }
  0x4a   :  { %v132_v37 = vld [vmem:[#allocation5 + $0x258] sm:$0xff]  ;;  %v2616_v41 = vcombine.high %v123_v34, %v131_v35  ;;  %v147_v42 = vld [vmem:[#allocation5 + $0x2d0] sm:$0xff]  ;;  %v2556_v10 = vcombine.high %v61_v63, %v69_v3  ;;  %v85_v12 = vld [vmem:[#allocation5 + $0xe0] sm:$0xff] }
  0x4b   :  { %v155_v47 = vld [vmem:[#allocation5 + $0x310] sm:$0xff]  ;;  %v2617_v48 = vcombine.low %v124_v36, %v132_v37  ;;  %v2632_v49 = vcombine.high %v139_v39, %v147_v42  ;;  %v101_v20 = vld [vmem:[#allocation5 + $0x160] sm:$0xff]  ;;  %v110_v29 = vld [vmem:[#allocation5 + $0x1a8] sm:$0xff] }
  0x4c   :  { %834 = vmatpush1.bf16.msra.mxu0 %v2611_v43  ;;  %875 = vmatpush1.bf16.msra.mxu1 %v2613_v44  ;;  %v2618_v43 = vcombine.high %v124_v36, %v132_v37  ;;  %v140_v44 = vld [vmem:[#allocation5 + $0x298] sm:$0xff]  ;;  %v163_v50 = vld [vmem:[#allocation5 + $0x350] sm:$0xff]  ;;  %v117_v26 = vld [vmem:[#allocation5 + $0x1e0] sm:$0xff] }
  0x4d   :  { %835 = vmatprep.subr.bf16.mxu0 %v2628_v45  ;;  %876 = vmatprep.subr.bf16.mxu1 %v2630_v46  ;;  %v148_v45 = vld [vmem:[#allocation5 + $0x2d8] sm:$0xff]  ;;  %v2615_v46 = vcombine.low %v123_v34, %v131_v35  ;;  %v171_v55 = vld [vmem:[#allocation5 + $0x390] sm:$0xff]  ;;  %v2648_v57 = vcombine.high %v155_v47, %v163_v50  ;;  %v133_v34 = vld [vmem:[#allocation5 + $0x260] sm:$0xff] }
  0x4e   :  { %v2633_v56 = vcombine.low %v140_v44, %v148_v45  ;;  %v179_v58 = vld [vmem:[#allocation5 + $0x3d0] sm:$0xff]  ;;  %v126_v37 = vld [vmem:[#allocation5 + $0x228] sm:$0xff] }
  0x4f   :  { %v2664_v2 = vcombine.high %v171_v55, %v179_v58 }
  0x50   :  { %836 = vmatpush1.bf16.msra.mxu0 %v2627_v51  ;;  %877 = vmatpush1.bf16.msra.mxu1 %v2629_v52  ;;  %v2634_v51 = vcombine.high %v140_v44, %v148_v45  ;;  %v156_v52 = vld [vmem:[#allocation5 + $0x318] sm:$0xff]  ;;  %v142_v45 = vld [vmem:[#allocation5 + $0x2a8] sm:$0xff] }
  0x51   :  { %837 = vmatprep.subr.bf16.mxu0 %v2644_v53  ;;  %878 = vmatprep.subr.bf16.mxu1 %v2646_v54  ;;  %v164_v53 = vld [vmem:[#allocation5 + $0x358] sm:$0xff]  ;;  %v2631_v54 = vcombine.low %v139_v39, %v147_v42  ;;  %v149_v42 = vld [vmem:[#allocation5 + $0x2e0] sm:$0xff] }
  0x52   :  { %v2649_v1 = vcombine.low %v156_v52, %v164_v53 }
  0x54   :  { %838 = vmatpush1.bf16.msra.mxu0 %v2643_v59  ;;  %879 = vmatpush1.bf16.msra.mxu1 %v2645_v60  ;;  %v2650_v59 = vcombine.high %v156_v52, %v164_v53  ;;  %v172_v60 = vld [vmem:[#allocation5 + $0x398] sm:$0xff]  ;;  %v158_v53 = vld [vmem:[#allocation5 + $0x328] sm:$0xff] }
  0x55   :  { %839 = vmatprep.subr.bf16.mxu0 %v2660_v61  ;;  %880 = vmatprep.subr.bf16.mxu1 %v2662_v62  ;;  %v180_v61 = vld [vmem:[#allocation5 + $0x3d8] sm:$0xff]  ;;  %v2647_v62 = vcombine.low %v155_v47, %v163_v50  ;;  %v165_v50 = vld [vmem:[#allocation5 + $0x360] sm:$0xff] }
  0x56   :  { %v2665_v9 = vcombine.low %v172_v60, %v180_v61 }
  0x58   :  { %840 = vmatpush1.bf16.msra.mxu0 %v2659_v4  ;;  %881 = vmatpush1.bf16.msra.mxu1 %v2661_v6  ;;  %v2666_v4 = vcombine.high %v172_v60, %v180_v61  ;;  %v70_v6 = vld [vmem:[#allocation5 + $0x68] sm:$0xff] }
  0x59   :  { %907 = vmatprep.subr.bf16.mxu0 %v2552_v7  ;;  %948 = vmatprep.subr.bf16.mxu1 %v2554_v8  ;;  %v2663_v7 = vcombine.low %v171_v55, %v179_v58  ;;  %v77_v8 = vld [vmem:[#allocation5 + $0xa0] sm:$0xff]  ;;  %v2558_v13 = vcombine.high %v62_v5, %v70_v6  ;;  %v2557_v18 = vcombine.low %v62_v5, %v70_v6  ;;  %v174_v61 = vld [vmem:[#allocation5 + $0x3a8] sm:$0xff]  ;;  %v64_v6 = vld [vmem:[#allocation5 + $0x38] sm:$0xff] }
  0x5a   :  { %v2572_v19 = vcombine.high %v77_v8, %v85_v12  ;;  %v181_v58 = vld [vmem:[#allocation5 + $0x3e0] sm:$0xff] }
  0x5b   :  { %858 = vmatmul.mubr.bf16.vlgmr.msra.gmra.mrb[0].mxu0 %v3278_v11  ;;  %899 = vmatmul.mubr.bf16.vlgmr.msra.gmra.mrb[0].mxu1 %v3278_v11 }
  0x5c   :  { %908 = vmatpush1.bf16.msra.mxu0 %v2551_v14  ;;  %949 = vmatpush1.bf16.msra.mxu1 %v2553_v15  ;;  %v78_v14 = vld [vmem:[#allocation5 + $0xa8] sm:$0xff] }
  0x5d   :  { %909 = vmatprep.subr.bf16.mxu0 %v2568_v16  ;;  %950 = vmatprep.subr.bf16.mxu1 %v2570_v17  ;;  %v86_v15 = vld [vmem:[#allocation5 + $0xe8] sm:$0xff]  ;;  %v2555_v16 = vcombine.low %v61_v63, %v69_v3  ;;  %v93_v17 = vld [vmem:[#allocation5 + $0x120] sm:$0xff]  ;;  %v71_v3 = vld [vmem:[#allocation5 + $0x70] sm:$0xff] }
  0x5e   :  { %939 = vmatprep.mubr.bf16.mxu0 %v3215_v0  ;;  %980 = vmatprep.mubr.bf16.mxu1 %v3215_v0  ;;  %v2574_v21 = vcombine.high %v78_v14, %v86_v15  ;;  %v2573_v27 = vcombine.low %v78_v14, %v86_v15  ;;  %v2588_v28 = vcombine.high %v93_v17, %v101_v20  ;;  %v80_v15 = vld [vmem:[#allocation5 + $0xb8] sm:$0xff] }
  0x60   :  { %910 = vmatpush1.bf16.msra.mxu0 %v2567_v22  ;;  %951 = vmatpush1.bf16.msra.mxu1 %v2569_v23  ;;  %v94_v22 = vld [vmem:[#allocation5 + $0x128] sm:$0xff] }
  0x61   :  { %911 = vmatprep.subr.bf16.mxu0 %v2584_v24  ;;  %952 = vmatprep.subr.bf16.mxu1 %v2586_v25  ;;  %v102_v23 = vld [vmem:[#allocation5 + $0x168] sm:$0xff]  ;;  %v2571_v24 = vcombine.low %v77_v8, %v85_v12  ;;  %v109_v25 = vld [vmem:[#allocation5 + $0x1a0] sm:$0xff]  ;;  %v87_v12 = vld [vmem:[#allocation5 + $0xf0] sm:$0xff] }
  0x62   :  { %v2589_v35 = vcombine.low %v94_v22, %v102_v23  ;;  %v2604_v36 = vcombine.high %v109_v25, %v117_v26 }
  0x64   :  { %912 = vmatpush1.bf16.msra.mxu0 %v2583_v30  ;;  %953 = vmatpush1.bf16.msra.mxu1 %v2585_v31  ;;  %v118_v30 = vld [vmem:[#allocation5 + $0x1e8] sm:$0xff]  ;;  %v2590_v31 = vcombine.high %v94_v22, %v102_v23  ;;  %v96_v23 = vld [vmem:[#allocation5 + $0x138] sm:$0xff] }
  0x65   :  { %913 = vmatprep.subr.bf16.mxu0 %v2600_v32  ;;  %954 = vmatprep.subr.bf16.mxu1 %v2602_v33  ;;  %v2587_v32 = vcombine.low %v93_v17, %v101_v20  ;;  %v125_v33 = vld [vmem:[#allocation5 + $0x220] sm:$0xff]  ;;  %v2606_v39 = vcombine.high %v110_v29, %v118_v30  ;;  %v103_v20 = vld [vmem:[#allocation5 + $0x170] sm:$0xff] }
  0x66   :  { %v2620_v44 = vcombine.high %v125_v33, %v133_v34 }
  0x68   :  { %914 = vmatpush1.bf16.msra.mxu0 %v2599_v38  ;;  %955 = vmatpush1.bf16.msra.mxu1 %v2601_v40  ;;  %v134_v38 = vld [vmem:[#allocation5 + $0x268] sm:$0xff]  ;;  %v2603_v40 = vcombine.low %v109_v25, %v117_v26 }
  0x69   :  { %915 = vmatprep.subr.bf16.mxu0 %v2616_v41  ;;  %956 = vmatprep.subr.bf16.mxu1 %v2618_v43  ;;  %v141_v41 = vld [vmem:[#allocation5 + $0x2a0] sm:$0xff]  ;;  %v2605_v43 = vcombine.low %v110_v29, %v118_v30  ;;  %v2622_v47 = vcombine.high %v126_v37, %v134_v38 }
  0x6a   :  { %v2636_v52 = vcombine.high %v141_v41, %v149_v42 }
  0x6c   :  { %916 = vmatpush1.bf16.msra.mxu0 %v2615_v46  ;;  %957 = vmatpush1.bf16.msra.mxu1 %v2617_v48  ;;  %v150_v46 = vld [vmem:[#allocation5 + $0x2e8] sm:$0xff]  ;;  %v2619_v48 = vcombine.low %v125_v33, %v133_v34 }
  0x6d   :  { %917 = vmatprep.subr.bf16.mxu0 %v2632_v49  ;;  %958 = vmatprep.subr.bf16.mxu1 %v2634_v51  ;;  %v157_v49 = vld [vmem:[#allocation5 + $0x320] sm:$0xff]  ;;  %v2621_v51 = vcombine.low %v126_v37, %v134_v38  ;;  %v2638_v55 = vcombine.high %v142_v45, %v150_v46 }
  0x6e   :  { %v2652_v60 = vcombine.high %v157_v49, %v165_v50 }
  0x70   :  { %918 = vmatpush1.bf16.msra.mxu0 %v2631_v54  ;;  %959 = vmatpush1.bf16.msra.mxu1 %v2633_v56  ;;  %v166_v54 = vld [vmem:[#allocation5 + $0x368] sm:$0xff]  ;;  %v2635_v56 = vcombine.low %v141_v41, %v149_v42 }
  0x71   :  { %919 = vmatprep.subr.bf16.mxu0 %v2648_v57  ;;  %960 = vmatprep.subr.bf16.mxu1 %v2650_v59  ;;  %v173_v57 = vld [vmem:[#allocation5 + $0x3a0] sm:$0xff]  ;;  %v2637_v59 = vcombine.low %v142_v45, %v150_v46  ;;  %v2654_v63 = vcombine.high %v158_v53, %v166_v54  ;;  %v144_v46 = vld [vmem:[#allocation5 + $0x2b8] sm:$0xff] }
  0x72   :  { %v2668_v5 = vcombine.high %v173_v57, %v181_v58 }
  0x74   :  { %920 = vmatpush1.bf16.msra.mxu0 %v2647_v62  ;;  %961 = vmatpush1.bf16.msra.mxu1 %v2649_v1  ;;  %v182_v62 = vld [vmem:[#allocation5 + $0x3e8] sm:$0xff]  ;;  %v2651_v1 = vcombine.low %v157_v49, %v165_v50  ;;  %v159_v50 = vld [vmem:[#allocation5 + $0x330] sm:$0xff] }
  0x75   :  { %921 = vmatprep.subr.bf16.mxu0 %v2664_v2  ;;  %962 = vmatprep.subr.bf16.mxu1 %v2666_v4  ;;  %v63_v2 = vld [vmem:[#allocation5 + $0x30] sm:$0xff]  ;;  %v2653_v4 = vcombine.low %v158_v53, %v166_v54  ;;  %v2670_v8 = vcombine.high %v174_v61, %v182_v62  ;;  %v160_v54 = vld [vmem:[#allocation5 + $0x338] sm:$0xff] }
  0x76   :  { %v2560_v14 = vcombine.high %v63_v2, %v71_v3 }
  0x78   :  { %922 = vmatpush1.bf16.msra.mxu0 %v2663_v7  ;;  %963 = vmatpush1.bf16.msra.mxu1 %v2665_v9  ;;  %v72_v7 = vld [vmem:[#allocation5 + $0x78] sm:$0xff]  ;;  %v2667_v9 = vcombine.low %v173_v57, %v181_v58  ;;  %v175_v58 = vld [vmem:[#allocation5 + $0x3b0] sm:$0xff] }
  0x79   :  { %989 = vmatprep.subr.bf16.mxu0 %v2556_v10  ;;  %1030 = vmatprep.subr.bf16.mxu1 %v2558_v13  ;;  %v79_v10 = vld [vmem:[#allocation5 + $0xb0] sm:$0xff]  ;;  %v2669_v13 = vcombine.low %v174_v61, %v182_v62  ;;  %v2562_v17 = vcombine.high %v64_v6, %v72_v7  ;;  %v176_v62 = vld [vmem:[#allocation5 + $0x3b8] sm:$0xff] }
  0x7a   :  { %v2576_v22 = vcombine.high %v79_v10, %v87_v12  ;;  %v2575_v26 = vcombine.low %v79_v10, %v87_v12  ;;  %v2989_v10 = vld [vmem:[#allocation7] sm:$0xff]  }
  0x7b   :  { %940 = vmatmul.mubr.bf16.vlgmr.msra.gmra.mrb[4].mxu0 %v3278_v11  ;;  %981 = vmatmul.mubr.bf16.vlgmr.msra.gmra.mrb[4].mxu1 %v3278_v11  ;;  %v2990_v12 = vld [vmem:[#allocation7 + $0x80] sm:$0xff]  }
  0x7c   :  { %990 = vmatpush1.bf16.msra.mxu0 %v2555_v16  ;;  %1031 = vmatpush1.bf16.msra.mxu1 %v2557_v18  ;;  %v88_v16 = vld [vmem:[#allocation5 + $0xf8] sm:$0xff]  ;;  %v2559_v18 = vcombine.low %v63_v2, %v71_v3 }
  0x7d   :  { %991 = vmatprep.subr.bf16.mxu0 %v2572_v19  ;;  %1032 = vmatprep.subr.bf16.mxu1 %v2574_v21  ;;  %v95_v19 = vld [vmem:[#allocation5 + $0x130] sm:$0xff]  ;;  %v2561_v21 = vcombine.low %v64_v6, %v72_v7  ;;  %v2578_v25 = vcombine.high %v80_v15, %v88_v16  ;;  %v2577_v29 = vcombine.low %v80_v15, %v88_v16  ;;  %v2993_v15 = vld [vmem:[#allocation7 + $0x8] sm:$0xff]  }
  0x7e   :  { %1021 = vmatprep.mubr.bf16.mxu0 %v3215_v0  ;;  %1062 = vmatprep.mubr.bf16.mxu1 %v3215_v0  ;;  %v2592_v30 = vcombine.high %v95_v19, %v103_v20  ;;  %v2591_v34 = vcombine.low %v95_v19, %v103_v20  ;;  %v2994_v16 = vld [vmem:[#allocation7 + $0x88] sm:$0xff]   ;;  %v2997_v19 = vld [vmem:[#allocation7 + $0x10] sm:$0xff]  }
  0x7f   :  { %v2998_v20 = vld [vmem:[#allocation7 + $0x90] sm:$0xff]  }
  0x80   :  { %992 = vmatpush1.bf16.msra.mxu0 %v2571_v24  ;;  %1033 = vmatpush1.bf16.msra.mxu1 %v2573_v27  ;;  %v104_v24 = vld [vmem:[#allocation5 + $0x178] sm:$0xff]  ;;  %v111_v27 = vld [vmem:[#allocation5 + $0x1b0] sm:$0xff] }
  0x81   :  { %993 = vmatprep.subr.bf16.mxu0 %v2588_v28  ;;  %1034 = vmatprep.subr.bf16.mxu1 %v2590_v31  ;;  %v119_v28 = vld [vmem:[#allocation5 + $0x1f0] sm:$0xff]  ;;  %v112_v31 = vld [vmem:[#allocation5 + $0x1b8] sm:$0xff]  ;;  %v2594_v33 = vcombine.high %v96_v23, %v104_v24  ;;  %v2593_v37 = vcombine.low %v96_v23, %v104_v24 }
  0x82   :  { %v2608_v38 = vcombine.high %v111_v27, %v119_v28  ;;  %v2607_v42 = vcombine.low %v111_v27, %v119_v28  ;;  %v3001_v23 = vld [vmem:[#allocation7 + $0x18] sm:$0xff]   ;;  %v3006_v27 = vld [vmem:[#allocation7 + $0xa0] sm:$0xff]   ;;  %v3007_v28 = vld [vmem:[#allocation7 + $0x68] sm:$0xff]  }
  0x83   :  { %v3002_v24 = vld [vmem:[#allocation7 + $0x98] sm:$0xff]  }
  0x84   :  { %994 = vmatpush1.bf16.msra.mxu0 %v2587_v32  ;;  %1035 = vmatpush1.bf16.msra.mxu1 %v2589_v35  ;;  %v120_v32 = vld [vmem:[#allocation5 + $0x1f8] sm:$0xff]  ;;  %v127_v35 = vld [vmem:[#allocation5 + $0x230] sm:$0xff] }
  0x85   :  { %995 = vmatprep.subr.bf16.mxu0 %v2604_v36  ;;  %1036 = vmatprep.subr.bf16.mxu1 %v2606_v39  ;;  %v135_v36 = vld [vmem:[#allocation5 + $0x270] sm:$0xff]  ;;  %v128_v39 = vld [vmem:[#allocation5 + $0x238] sm:$0xff]  ;;  %v2610_v41 = vcombine.high %v112_v31, %v120_v32  ;;  %v2609_v45 = vcombine.low %v112_v31, %v120_v32  ;;  %v3010_v31 = vld [vmem:[#allocation7 + $0xa8] sm:$0xff]  }
  0x86   :  { %v2623_v49 = vcombine.low %v127_v35, %v135_v36  ;;  %v3011_v32 = vld [vmem:[#allocation7 + $0x70] sm:$0xff]  }
  0x88   :  { %996 = vmatpush1.bf16.msra.mxu0 %v2603_v40  ;;  %1037 = vmatpush1.bf16.msra.mxu1 %v2605_v43  ;;  %v136_v40 = vld [vmem:[#allocation5 + $0x278] sm:$0xff]  ;;  %v143_v43 = vld [vmem:[#allocation5 + $0x2b0] sm:$0xff] }
  0x89   :  { %997 = vmatprep.subr.bf16.mxu0 %v2620_v44  ;;  %1038 = vmatprep.subr.bf16.mxu1 %v2622_v47  ;;  %v151_v44 = vld [vmem:[#allocation5 + $0x2f0] sm:$0xff]  ;;  %v152_v47 = vld [vmem:[#allocation5 + $0x2f8] sm:$0xff] }
  0x8a   :  { %v2640_v53 = vcombine.high %v143_v43, %v151_v44  ;;  %v2639_v57 = vcombine.low %v143_v43, %v151_v44 }
  0x8c   :  { %998 = vmatpush1.bf16.msra.mxu0 %v2619_v48  ;;  %1039 = vmatpush1.bf16.msra.mxu1 %v2621_v51  ;;  %v2626_v48 = vcombine.high %v128_v39, %v136_v40  ;;  %v167_v51 = vld [vmem:[#allocation5 + $0x370] sm:$0xff] }
  0x8d   :  { %999 = vmatprep.subr.bf16.mxu0 %v2636_v52  ;;  %1040 = vmatprep.subr.bf16.mxu1 %v2638_v55  ;;  %v2625_v52 = vcombine.low %v128_v39, %v136_v40  ;;  %v168_v55 = vld [vmem:[#allocation5 + $0x378] sm:$0xff]  ;;  %v2656_v61 = vcombine.high %v159_v50, %v167_v51  ;;  %v2655_v2 = vcombine.low %v159_v50, %v167_v51  ;;  %v3019_v40 = vld [vmem:[#allocation7 + $0x140] sm:$0xff]  }
  0x8e   :  { %v2657_v3 = vcombine.low %v160_v54, %v168_v55  ;;  %v3018_v39 = vld [vmem:[#allocation7 + $0xb8] sm:$0xff]  }
  0x90   :  { %1000 = vmatpush1.bf16.msra.mxu0 %v2635_v56  ;;  %1041 = vmatpush1.bf16.msra.mxu1 %v2637_v59  ;;  %v2642_v56 = vcombine.high %v144_v46, %v152_v47  ;;  %v183_v59 = vld [vmem:[#allocation5 + $0x3f0] sm:$0xff] }
  0x91   :  { %1001 = vmatprep.subr.bf16.mxu0 %v2652_v60  ;;  %1042 = vmatprep.subr.bf16.mxu1 %v2654_v63  ;;  %v2641_v60 = vcombine.low %v144_v46, %v152_v47  ;;  %v184_v63 = vld [vmem:[#allocation5 + $0x3f8] sm:$0xff]  ;;  %v2671_v6 = vcombine.low %v175_v58, %v183_v59 }
  0x92   :  { %v2673_v7 = vcombine.low %v176_v62, %v184_v63 }
  0x94   :  { %1002 = vmatpush1.bf16.msra.mxu0 %v2651_v1  ;;  %1043 = vmatpush1.bf16.msra.mxu1 %v2653_v4  ;;  %v2658_v1 = vcombine.high %v160_v54, %v168_v55  ;;  %v2672_v4 = vcombine.high %v175_v58, %v183_v59  ;;  %v3022_v58 = vld [vmem:[#allocation7 + $0x180] sm:$0xff]   ;;  %v3023_v59 = vld [vmem:[#allocation7 + $0x148] sm:$0xff]  }
  0x95   :  { %1003 = vmatprep.subr.bf16.mxu0 %v2668_v5  ;;  %1044 = vmatprep.subr.bf16.mxu1 %v2670_v8  ;;  %v2674_v5 = vcombine.high %v176_v62, %v184_v63  ;;  %v2987_v8 = vld [vmem:[#allocation7 + $0x40] sm:$0xff]   ;;  %v3026_v62 = vld [vmem:[#allocation7 + $0x188] sm:$0xff]   ;;  %v3027_v63 = vld [vmem:[#allocation7 + $0x150] sm:$0xff]  }
  0x98   :  { %1004 = vmatpush1.bf16.msra.mxu0 %v2667_v9  ;;  %1045 = vmatpush1.bf16.msra.mxu1 %v2669_v13  ;;  %v2988_v9 = vld [vmem:[#allocation7 + $0xc0] sm:$0xff]   ;;  %v2991_v13 = vld [vmem:[#allocation7 + $0x48] sm:$0xff]  }
  0x99   :  { %1071 = vmatprep.subr.bf16.mxu0 %v2560_v14  ;;  %1112 = vmatprep.subr.bf16.mxu1 %v2562_v17  ;;  %v2992_v14 = vld [vmem:[#allocation7 + $0xc8] sm:$0xff]   ;;  %v2995_v17 = vld [vmem:[#allocation7 + $0x50] sm:$0xff]  }
  0x9b   :  { %1022 = vmatmul.mubr.bf16.vlgmr.msra.gmra.mrb[8].mxu0 %v3278_v11  ;;  %1063 = vmatmul.mubr.bf16.vlgmr.msra.gmra.mrb[8].mxu1 %v3278_v11 }
  0x9c   :  { %1072 = vmatpush1.bf16.msra.mxu0 %v2559_v18  ;;  %1113 = vmatpush1.bf16.msra.mxu1 %v2561_v21  ;;  %v2996_v18 = vld [vmem:[#allocation7 + $0xd0] sm:$0xff]   ;;  %v2999_v21 = vld [vmem:[#allocation7 + $0x58] sm:$0xff]  }
  0x9d   :  { %1073 = vmatprep.subr.bf16.mxu0 %v2576_v22  ;;  %1114 = vmatprep.subr.bf16.mxu1 %v2578_v25  ;;  %v3000_v22 = vld [vmem:[#allocation7 + $0xd8] sm:$0xff]   ;;  %v3003_v25 = vld [vmem:[#allocation7 + $0x60] sm:$0xff]  }
  0x9e   :  { %1103 = vmatprep.mubr.bf16.mxu0 %v3215_v0  ;;  %1144 = vmatprep.mubr.bf16.mxu1 %v3215_v0  ;;  %v2624_v0 = vcombine.high %v127_v35, %v135_v36  ;;  %v3014_v35 = vld [vmem:[#allocation7 + $0xb0] sm:$0xff]   ;;  %v3015_v36 = vld [vmem:[#allocation7 + $0x78] sm:$0xff]  }
  0xa0   :  { %1074 = vmatpush1.bf16.msra.mxu0 %v2575_v26  ;;  %1115 = vmatpush1.bf16.msra.mxu1 %v2577_v29  ;;  %v3005_v26 = vld [vmem:[#allocation7 + $0x20] sm:$0xff]   ;;  %v3008_v29 = vld [vmem:[#allocation7 + $0xe8] sm:$0xff]  }
  0xa1   :  { %1075 = vmatprep.subr.bf16.mxu0 %v2592_v30  ;;  %1116 = vmatprep.subr.bf16.mxu1 %v2594_v33  ;;  %v3009_v30 = vld [vmem:[#allocation7 + $0x28] sm:$0xff]   ;;  %v3012_v33 = vld [vmem:[#allocation7 + $0xf0] sm:$0xff]  }
  0xa4   :  { %1076 = vmatpush1.bf16.msra.mxu0 %v2591_v34  ;;  %1117 = vmatpush1.bf16.msra.mxu1 %v2593_v37  ;;  %v3013_v34 = vld [vmem:[#allocation7 + $0x30] sm:$0xff]   ;;  %v3016_v37 = vld [vmem:[#allocation7 + $0xf8] sm:$0xff]  }
  0xa5   :  { %1077 = vmatprep.subr.bf16.mxu0 %v2608_v38  ;;  %1118 = vmatprep.subr.bf16.mxu1 %v2610_v41  ;;  %v3017_v38 = vld [vmem:[#allocation7 + $0x38] sm:$0xff]   ;;  %v3020_v41 = vld [vmem:[#allocation7 + $0x1c0] sm:$0xff]  }
  0xa8   :  { %1078 = vmatpush1.bf16.msra.mxu0 %v2607_v42  ;;  %1119 = vmatpush1.bf16.msra.mxu1 %v2609_v45 }
  0xa9   :  { %1079 = vmatprep.subr.bf16.mxu0 %v2624_v0  ;;  %1120 = vmatprep.subr.bf16.mxu1 %v2626_v48 }
  0xac   :  { %1080 = vmatpush1.bf16.msra.mxu0 %v2623_v49  ;;  %1121 = vmatpush1.bf16.msra.mxu1 %v2625_v52 }
  0xad   :  { %1081 = vmatprep.subr.bf16.mxu0 %v2640_v53  ;;  %1122 = vmatprep.subr.bf16.mxu1 %v2642_v56  ;;  %v3021_v56 = vld [vmem:[#allocation7 + $0x100] sm:$0xff]  }
  0xb0   :  { %1082 = vmatpush1.bf16.msra.mxu0 %v2639_v57  ;;  %1123 = vmatpush1.bf16.msra.mxu1 %v2641_v60  ;;  %v3024_v60 = vld [vmem:[#allocation7 + $0x1c8] sm:$0xff]  }
  0xb1   :  { %1083 = vmatprep.subr.bf16.mxu0 %v2656_v61  ;;  %1124 = vmatprep.subr.bf16.mxu1 %v2658_v1  ;;  %v3025_v61 = vld [vmem:[#allocation7 + $0x108] sm:$0xff]   ;;  %v3028_v1 = vld [vmem:[#allocation7 + $0x1d0] sm:$0xff]  }
  0xb4   :  { %1084 = vmatpush1.bf16.msra.mxu0 %v2655_v2  ;;  %1125 = vmatpush1.bf16.msra.mxu1 %v2657_v3  ;;  %v3029_v2 = vld [vmem:[#allocation7 + $0x110] sm:$0xff]  }
  0xb5   :  { %1085 = vmatprep.subr.bf16.mxu0 %v2672_v4  ;;  %1126 = vmatprep.subr.bf16.mxu1 %v2674_v5  ;;  %v3030_v3 = vld [vmem:[#allocation7 + $0x190] sm:$0xff]   ;;  %v3031_v4 = vld [vmem:[#allocation7 + $0x158] sm:$0xff]  }
  0xb6   :  { %v3032_v5 = vld [vmem:[#allocation7 + $0x1d8] sm:$0xff]  }
  0xb8   :  { %1086 = vmatpush1.bf16.msra.mxu0 %v2671_v6  ;;  %1127 = vmatpush1.bf16.msra.mxu1 %v2673_v7  ;;  %v3033_v6 = vld [vmem:[#allocation7 + $0x118] sm:$0xff]  }
  0xb9   :  { %2803 = vmatprep.subr.bf16.mxu0 %v2987_v8  ;;  %2825 = vmatprep.subr.bf16.mxu1 %v2988_v9  ;;  %v3034_v7 = vld [vmem:[#allocation7 + $0x198] sm:$0xff]   ;;  %v3035_v8 = vld [vmem:[#allocation7 + $0x160] sm:$0xff]  }
  0xba   :  { %v3036_v9 = vld [vmem:[#allocation7 + $0x1e0] sm:$0xff]  }
  0xbb   :  { %1104 = vmatmul.mubr.bf16.vlgmr.msra.gmra.mrb[12].mxu0 %v3278_v11  ;;  %1145 = vmatmul.mubr.bf16.vlgmr.msra.gmra.mrb[12].mxu1 %v3278_v11  ;;  %v3004_v11 = vld [vmem:[#allocation7 + $0xe0] sm:$0xff]  }
  0xbc   :  { %2804 = vmatpush3.bf16.msra.mxu0 %v2989_v10  ;;  %2826 = vmatpush3.bf16.msra.mxu1 %v2990_v12  ;;  %v3037_v10 = vld [vmem:[#allocation7 + $0x120] sm:$0xff]  }
  0xbd   :  { %2805 = vmatprep.subr.bf16.mxu0 %v2991_v13  ;;  %2827 = vmatprep.subr.bf16.mxu1 %v2992_v14  ;;  %v3038_v12 = vld [vmem:[#allocation7 + $0x1a0] sm:$0xff]   ;;  %v3039_v13 = vld [vmem:[#allocation7 + $0x168] sm:$0xff]  }
  0xbe   :  { %v3040_v14 = vld [vmem:[#allocation7 + $0x1e8] sm:$0xff]  }
  0xc0   :  { %2806 = vmatpush3.bf16.msra.mxu0 %v2993_v15  ;;  %2828 = vmatpush3.bf16.msra.mxu1 %v2994_v16  ;;  %v3041_v15 = vld [vmem:[#allocation7 + $0x128] sm:$0xff]  }
  0xc1   :  { %2807 = vmatprep.subr.bf16.mxu0 %v2995_v17  ;;  %2829 = vmatprep.subr.bf16.mxu1 %v2996_v18  ;;  %v3042_v16 = vld [vmem:[#allocation7 + $0x1a8] sm:$0xff]   ;;  %v3043_v17 = vld [vmem:[#allocation7 + $0x170] sm:$0xff]  }
  0xc2   :  { %v3044_v18 = vld [vmem:[#allocation7 + $0x1f0] sm:$0xff]  }
  0xc4   :  { %2808 = vmatpush3.bf16.msra.mxu0 %v2997_v19  ;;  %2830 = vmatpush3.bf16.msra.mxu1 %v2998_v20  ;;  %v3045_v19 = vld [vmem:[#allocation7 + $0x130] sm:$0xff]  }
  0xc5   :  { %2809 = vmatprep.subr.bf16.mxu0 %v2999_v21  ;;  %2831 = vmatprep.subr.bf16.mxu1 %v3000_v22  ;;  %v3046_v20 = vld [vmem:[#allocation7 + $0x1b0] sm:$0xff]   ;;  %v3047_v21 = vld [vmem:[#allocation7 + $0x178] sm:$0xff]  }
  0xc6   :  { %v3048_v22 = vld [vmem:[#allocation7 + $0x1f8] sm:$0xff]  }
  0xc8   :  { %2810 = vmatpush3.bf16.msra.mxu0 %v3001_v23  ;;  %2832 = vmatpush3.bf16.msra.mxu1 %v3002_v24  ;;  %v3049_v24 = vld [vmem:[#allocation7 + $0x138] sm:$0xff]  }
  0xc9   :  { %2811 = vmatprep.subr.bf16.mxu0 %v3003_v25  ;;  %2833 = vmatprep.subr.bf16.mxu1 %v3004_v11 }
  0xcc   :  { %2812 = vmatpush3.bf16.msra.mxu0 %v3005_v26  ;;  %2834 = vmatpush3.bf16.msra.mxu1 %v3006_v27  ;;  %v3050_v27 = vld [vmem:[#allocation7 + $0x1b8] sm:$0xff]  }
  0xcd   :  { %2813 = vmatprep.subr.bf16.mxu0 %v3007_v28  ;;  %2835 = vmatprep.subr.bf16.mxu1 %v3008_v29  ;;  %v3051_v28 = vld [vmem:[#allocation7 + $0x240] sm:$0xff]  }
  0xd0   :  { %2814 = vmatpush3.bf16.msra.mxu0 %v3009_v30  ;;  %2836 = vmatpush3.bf16.msra.mxu1 %v3010_v31 }
  0xd1   :  { %2815 = vmatprep.subr.bf16.mxu0 %v3011_v32  ;;  %2837 = vmatprep.subr.bf16.mxu1 %v3012_v33  ;;  %v3052_v33 = vld [vmem:[#allocation7 + $0x2c0] sm:$0xff]  }
  0xd4   :  { %2816 = vmatpush3.bf16.msra.mxu0 %v3013_v34  ;;  %2838 = vmatpush3.bf16.msra.mxu1 %v3014_v35 }
  0xd5   :  { %2817 = vmatprep.subr.bf16.mxu0 %v3015_v36  ;;  %2839 = vmatprep.subr.bf16.mxu1 %v3016_v37 }
  0xd8   :  { %2818 = vmatpush3.bf16.msra.mxu0 %v3017_v38  ;;  %2840 = vmatpush3.bf16.msra.mxu1 %v3018_v39 }
  0xd9   :  { %2847 = vmatprep.subr.bf16.mxu0 %v3019_v40  ;;  %2869 = vmatprep.subr.bf16.mxu1 %v3020_v41  ;;  %v3053_v41 = vld [vmem:[#allocation7 + $0x200] sm:$0xff]  }
 0x12e   :  { %v859_v42 = vpop.f32.mrb[0].mxu0  ;;  %v900_v44 = vpop.f32.mrb[0].mxu1 }
 0x12f   :  { %v1153_v43 = vmax.f32 %v859_v42, 0.0  ;;  %v861_v45 = vpop.f32.mrb[1].mxu0  ;;  %v1155_v0 = vmax.f32 %v900_v44, 0.0  ;;  %v902_v47 = vpop.f32.mrb[1].mxu1  ;;  %v3055_v44 = vld [vmem:[#allocation7 + $0x248] sm:$0xff]  }
 0x130   :  { %v1154_v46 = vmax.f32 %v861_v45, 0.0  ;;  %v863_v48 = vpop.f32.mrb[2].mxu0  ;;  %v1156_v50 = vmax.f32 %v902_v47, 0.0  ;;  %v904_v51 = vpop.f32.mrb[2].mxu1  ;;  %v3056_v45 = vld [vmem:[#allocation7 + $0x2c8] sm:$0xff]   ;;  %v3059_v47 = vld [vmem:[#allocation7 + $0x250] sm:$0xff]  }
 0x131   :  { %v1169_v49 = vpack.c.bf16 %v1153_v43, %v1153_v43  ;;  %v864_v52 = vpop.f32.mrb[3].mxu0  ;;  %v1171_v53 = vpack.c.bf16 %v1155_v0, %v1155_v0  ;;  %v905_v55 = vpop.f32.mrb[3].mxu1  ;;  %v3054_v43 = vld [vmem:[#allocation7 + $0x280] sm:$0xff]   ;;  %v3057_v0 = vld [vmem:[#allocation7 + $0x208] sm:$0xff]   ;;  %v3060_v48 = vld [vmem:[#allocation7 + $0x2d0] sm:$0xff]  }
 0x132   :  { %v1170_v54 = vpack.c.bf16 %v1154_v46, %v1154_v46  ;;  %v1172_v57 = vpack.c.bf16 %v1156_v50, %v1156_v50  ;;  %v3058_v46 = vld [vmem:[#allocation7 + $0x288] sm:$0xff]   ;;  %v3062_v50 = vld [vmem:[#allocation7 + $0x290] sm:$0xff]   ;;  %v3063_v51 = vld [vmem:[#allocation7 + $0x258] sm:$0xff]  }
 0x133   :  { %v3064_v52 = vld [vmem:[#allocation7 + $0x2d8] sm:$0xff]   ;;  %v3067_v55 = vld [vmem:[#allocation7 + $0x260] sm:$0xff]  }
 0x134   :  { %2241 = vmatprep.mubr.bf16.mxu0 %v1170_v54  ;;  %2281 = vmatprep.mubr.bf16.mxu1 %v1172_v57  ;;  %v3066_v54 = vld [vmem:[#allocation7 + $0x298] sm:$0xff]   ;;  %v3069_v57 = vld [vmem:[#allocation7 + $0x220] sm:$0xff]  }
 0x135   :  { %2242 = vmatmul.mubr.bf16.vlgmr.msra.gmra.mrb[16].mxu0 %v1169_v49  ;;  %2282 = vmatmul.mubr.bf16.vlgmr.msra.gmra.mrb[16].mxu1 %v1171_v53  ;;  %v3061_v49 = vld [vmem:[#allocation7 + $0x210] sm:$0xff]   ;;  %v3065_v53 = vld [vmem:[#allocation7 + $0x218] sm:$0xff]  }
 0x136   :  { %2848 = vmatpush3.bf16.msra.mxu0 %v3021_v56  ;;  %2870 = vmatpush3.bf16.msra.mxu1 %v3022_v58  ;;  %v3068_v56 = vld [vmem:[#allocation7 + $0x2e0] sm:$0xff]  }
 0x137   :  { %2849 = vmatprep.subr.bf16.mxu0 %v3023_v59  ;;  %2871 = vmatprep.subr.bf16.mxu1 %v3024_v60  ;;  %v3070_v58 = vld [vmem:[#allocation7 + $0x2a0] sm:$0xff]   ;;  %v3071_v59 = vld [vmem:[#allocation7 + $0x268] sm:$0xff]  }
 0x138   :  { %v3072_v60 = vld [vmem:[#allocation7 + $0x2e8] sm:$0xff]  }
 0x13a   :  { %2850 = vmatpush3.bf16.msra.mxu0 %v3025_v61  ;;  %2872 = vmatpush3.bf16.msra.mxu1 %v3026_v62  ;;  %v3073_v61 = vld [vmem:[#allocation7 + $0x228] sm:$0xff]  }
 0x13b   :  { %2851 = vmatprep.subr.bf16.mxu0 %v3027_v63  ;;  %2873 = vmatprep.subr.bf16.mxu1 %v3028_v1  ;;  %v3074_v62 = vld [vmem:[#allocation7 + $0x2a8] sm:$0xff]   ;;  %v3075_v63 = vld [vmem:[#allocation7 + $0x270] sm:$0xff]  }
 0x13c   :  { %v3076_v1 = vld [vmem:[#allocation7 + $0x2f0] sm:$0xff]  }
 0x13e   :  { %2852 = vmatpush3.bf16.msra.mxu0 %v3029_v2  ;;  %2874 = vmatpush3.bf16.msra.mxu1 %v3030_v3  ;;  %v3077_v2 = vld [vmem:[#allocation7 + $0x230] sm:$0xff]  }
 0x13f   :  { %2853 = vmatprep.subr.bf16.mxu0 %v3031_v4  ;;  %2875 = vmatprep.subr.bf16.mxu1 %v3032_v5  ;;  %v3078_v3 = vld [vmem:[#allocation7 + $0x2b0] sm:$0xff]   ;;  %v3079_v4 = vld [vmem:[#allocation7 + $0x278] sm:$0xff]  }
 0x140   :  { %v3080_v5 = vld [vmem:[#allocation7 + $0x2f8] sm:$0xff]  }
 0x142   :  { %2854 = vmatpush3.bf16.msra.mxu0 %v3033_v6  ;;  %2876 = vmatpush3.bf16.msra.mxu1 %v3034_v7  ;;  %v3081_v7 = vld [vmem:[#allocation7 + $0x238] sm:$0xff]  }
 0x143   :  { %2855 = vmatprep.subr.bf16.mxu0 %v3035_v8  ;;  %2877 = vmatprep.subr.bf16.mxu1 %v3036_v9 }
 0x146   :  { %2856 = vmatpush3.bf16.msra.mxu0 %v3037_v10  ;;  %2878 = vmatpush3.bf16.msra.mxu1 %v3038_v12  ;;  %v3082_v12 = vld [vmem:[#allocation7 + $0x2b8] sm:$0xff]  }
 0x147   :  { %2857 = vmatprep.subr.bf16.mxu0 %v3039_v13  ;;  %2879 = vmatprep.subr.bf16.mxu1 %v3040_v14  ;;  %v3083_v13 = vld [vmem:[#allocation7 + $0x340] sm:$0xff]  }
 0x14a   :  { %2858 = vmatpush3.bf16.msra.mxu0 %v3041_v15  ;;  %2880 = vmatpush3.bf16.msra.mxu1 %v3042_v16 }
 0x14b   :  { %2859 = vmatprep.subr.bf16.mxu0 %v3043_v17  ;;  %2881 = vmatprep.subr.bf16.mxu1 %v3044_v18  ;;  %v3084_v18 = vld [vmem:[#allocation7 + $0x3c0] sm:$0xff]  }
 0x14e   :  { %v941_v23 = vpop.f32.mrb[4].mxu0  ;;  %2860 = vmatpush3.bf16.msra.mxu0 %v3045_v19  ;;  %v982_v11 = vpop.f32.mrb[4].mxu1  ;;  %2882 = vmatpush3.bf16.msra.mxu1 %v3046_v20 }
 0x14f   :  { %v1157_v25 = vmax.f32 %v941_v23, 0.0  ;;  %v943_v26 = vpop.f32.mrb[5].mxu0  ;;  %2861 = vmatprep.subr.bf16.mxu0 %v3047_v21  ;;  %v1159_v29 = vmax.f32 %v982_v11, 0.0  ;;  %v984_v31 = vpop.f32.mrb[5].mxu1  ;;  %2883 = vmatprep.subr.bf16.mxu1 %v3048_v22  ;;  %v3085_v11 = vld [vmem:[#allocation7 + $0x300] sm:$0xff]  }
 0x150   :  { %v1158_v30 = vmax.f32 %v943_v26, 0.0  ;;  %v945_v32 = vpop.f32.mrb[6].mxu0  ;;  %v1160_v35 = vmax.f32 %v984_v31, 0.0  ;;  %v986_v36 = vpop.f32.mrb[6].mxu1  ;;  %v3090_v31 = vld [vmem:[#allocation7 + $0x388] sm:$0xff]  }
 0x151   :  { %v1173_v34 = vpack.c.bf16 %v1157_v25, %v1157_v25  ;;  %v946_v37 = vpop.f32.mrb[7].mxu0  ;;  %v1175_v38 = vpack.c.bf16 %v1159_v29, %v1159_v29  ;;  %v987_v40 = vpop.f32.mrb[7].mxu1  ;;  %v3088_v29 = vld [vmem:[#allocation7 + $0x3c8] sm:$0xff]   ;;  %v3091_v32 = vld [vmem:[#allocation7 + $0x350] sm:$0xff]   ;;  %v3095_v36 = vld [vmem:[#allocation7 + $0x358] sm:$0xff]  }
 0x152   :  { %v1174_v39 = vpack.c.bf16 %v1158_v30, %v1158_v30  ;;  %2862 = vmatpush3.bf16.msra.mxu0 %v3049_v24  ;;  %v1176_v42 = vpack.c.bf16 %v1160_v35, %v1160_v35  ;;  %2884 = vmatpush3.bf16.msra.mxu1 %v3050_v27  ;;  %v3086_v27 = vld [vmem:[#allocation7 + $0x380] sm:$0xff]   ;;  %v3089_v30 = vld [vmem:[#allocation7 + $0x308] sm:$0xff]   ;;  %v3094_v35 = vld [vmem:[#allocation7 + $0x390] sm:$0xff]  }
 0x153   :  { %2891 = vmatprep.subr.bf16.mxu0 %v3051_v28  ;;  %2913 = vmatprep.subr.bf16.mxu1 %v3052_v33  ;;  %v3087_v28 = vld [vmem:[#allocation7 + $0x348] sm:$0xff]   ;;  %v3092_v33 = vld [vmem:[#allocation7 + $0x3d0] sm:$0xff]   ;;  %v3096_v37 = vld [vmem:[#allocation7 + $0x3d8] sm:$0xff]  }
 0x154   :  { %2321 = vmatprep.mubr.bf16.mxu0 %v1174_v39  ;;  %2361 = vmatprep.mubr.bf16.mxu1 %v1176_v42  ;;  %v3098_v39 = vld [vmem:[#allocation7 + $0x398] sm:$0xff]   ;;  %v3099_v40 = vld [vmem:[#allocation7 + $0x360] sm:$0xff]  }
 0x155   :  { %2322 = vmatmul.mubr.bf16.vlgmr.msra.gmra.mrb[20].mxu0 %v1173_v34  ;;  %2362 = vmatmul.mubr.bf16.vlgmr.msra.gmra.mrb[20].mxu1 %v1175_v38  ;;  %v3093_v34 = vld [vmem:[#allocation7 + $0x310] sm:$0xff]   ;;  %v3097_v38 = vld [vmem:[#allocation7 + $0x318] sm:$0xff]   ;;  %v3101_v42 = vld [vmem:[#allocation7 + $0x320] sm:$0xff]  }
 0x156   :  { %2892 = vmatpush3.bf16.msra.mxu0 %v3053_v41  ;;  %2914 = vmatpush3.bf16.msra.mxu1 %v3054_v43  ;;  %v3100_v41 = vld [vmem:[#allocation7 + $0x3e0] sm:$0xff]  }
 0x157   :  { %2893 = vmatprep.subr.bf16.mxu0 %v3055_v44  ;;  %2915 = vmatprep.subr.bf16.mxu1 %v3056_v45  ;;  %v3102_v43 = vld [vmem:[#allocation7 + $0x3a0] sm:$0xff]   ;;  %v3103_v44 = vld [vmem:[#allocation7 + $0x368] sm:$0xff]  }
 0x158   :  { %v3104_v45 = vld [vmem:[#allocation7 + $0x3e8] sm:$0xff]  }
 0x15a   :  { %2894 = vmatpush3.bf16.msra.mxu0 %v3057_v0  ;;  %2916 = vmatpush3.bf16.msra.mxu1 %v3058_v46  ;;  %v3105_v0 = vld [vmem:[#allocation7 + $0x328] sm:$0xff]  }
 0x15b   :  { %2895 = vmatprep.subr.bf16.mxu0 %v3059_v47  ;;  %2917 = vmatprep.subr.bf16.mxu1 %v3060_v48  ;;  %v3106_v46 = vld [vmem:[#allocation7 + $0x3a8] sm:$0xff]   ;;  %v3107_v47 = vld [vmem:[#allocation7 + $0x370] sm:$0xff]  }
 0x15c   :  { %v3108_v48 = vld [vmem:[#allocation7 + $0x3f0] sm:$0xff]  }
 0x15e   :  { %2896 = vmatpush3.bf16.msra.mxu0 %v3061_v49  ;;  %2918 = vmatpush3.bf16.msra.mxu1 %v3062_v50  ;;  %v3109_v49 = vld [vmem:[#allocation7 + $0x330] sm:$0xff]  }
 0x15f   :  { %2897 = vmatprep.subr.bf16.mxu0 %v3063_v51  ;;  %2919 = vmatprep.subr.bf16.mxu1 %v3064_v52  ;;  %v3110_v50 = vld [vmem:[#allocation7 + $0x3b0] sm:$0xff]   ;;  %v3111_v51 = vld [vmem:[#allocation7 + $0x378] sm:$0xff]  }
 0x160   :  { %v3112_v52 = vld [vmem:[#allocation7 + $0x3f8] sm:$0xff]  }
 0x162   :  { %2898 = vmatpush3.bf16.msra.mxu0 %v3065_v53  ;;  %2920 = vmatpush3.bf16.msra.mxu1 %v3066_v54  ;;  %v3113_v54 = vld [vmem:[#allocation7 + $0x338] sm:$0xff]  }
 0x163   :  { %2899 = vmatprep.subr.bf16.mxu0 %v3067_v55  ;;  %2921 = vmatprep.subr.bf16.mxu1 %v3068_v56 }
 0x166   :  { %2900 = vmatpush3.bf16.msra.mxu0 %v3069_v57  ;;  %2922 = vmatpush3.bf16.msra.mxu1 %v3070_v58  ;;  %v3114_v58 = vld [vmem:[#allocation7 + $0x3b8] sm:$0xff]  }
 0x167   :  { %2901 = vmatprep.subr.bf16.mxu0 %v3071_v59  ;;  %2923 = vmatprep.subr.bf16.mxu1 %v3072_v60 }
 0x16a   :  { %2902 = vmatpush3.bf16.msra.mxu0 %v3073_v61  ;;  %2924 = vmatpush3.bf16.msra.mxu1 %v3074_v62 }
 0x16b   :  { %2903 = vmatprep.subr.bf16.mxu0 %v3075_v63  ;;  %2925 = vmatprep.subr.bf16.mxu1 %v3076_v1 }
 0x16e   :  { %v1023_v6 = vpop.f32.mrb[8].mxu0  ;;  %2904 = vmatpush3.bf16.msra.mxu0 %v3077_v2  ;;  %v1064_v9 = vpop.f32.mrb[8].mxu1  ;;  %2926 = vmatpush3.bf16.msra.mxu1 %v3078_v3 }
 0x16f   :  { %v1161_v8 = vmax.f32 %v1023_v6, 0.0  ;;  %v1025_v10 = vpop.f32.mrb[9].mxu0  ;;  %2905 = vmatprep.subr.bf16.mxu0 %v3079_v4  ;;  %v1163_v14 = vmax.f32 %v1064_v9, 0.0  ;;  %v1066_v16 = vpop.f32.mrb[9].mxu1  ;;  %2927 = vmatprep.subr.bf16.mxu1 %v3080_v5 }
 0x170   :  { %v1162_v15 = vmax.f32 %v1025_v10, 0.0  ;;  %v1027_v17 = vpop.f32.mrb[10].mxu0  ;;  %v1164_v20 = vmax.f32 %v1066_v16, 0.0  ;;  %v1068_v21 = vpop.f32.mrb[10].mxu1 }
 0x171   :  { %v1177_v19 = vpack.c.bf16 %v1161_v8, %v1161_v8  ;;  %v1028_v22 = vpop.f32.mrb[11].mxu0  ;;  %v1179_v23 = vpack.c.bf16 %v1163_v14, %v1163_v14  ;;  %v1069_v25 = vpop.f32.mrb[11].mxu1 }
 0x172   :  { %v1178_v24 = vpack.c.bf16 %v1162_v15, %v1162_v15  ;;  %2906 = vmatpush3.bf16.msra.mxu0 %v3081_v7  ;;  %v1180_v26 = vpack.c.bf16 %v1164_v20, %v1164_v20  ;;  %2928 = vmatpush3.bf16.msra.mxu1 %v3082_v12 }
 0x173   :  { %2935 = vmatprep.subr.bf16.mxu0 %v3083_v13  ;;  %2957 = vmatprep.subr.bf16.mxu1 %v3084_v18 }
 0x174   :  { %2401 = vmatprep.mubr.bf16.mxu0 %v1178_v24  ;;  %2441 = vmatprep.mubr.bf16.mxu1 %v1180_v26 }
 0x175   :  { %2402 = vmatmul.mubr.bf16.vlgmr.msra.gmra.mrb[24].mxu0 %v1177_v19  ;;  %2442 = vmatmul.mubr.bf16.vlgmr.msra.gmra.mrb[24].mxu1 %v1179_v23 }
 0x176   :  { %2936 = vmatpush3.bf16.msra.mxu0 %v3085_v11  ;;  %2958 = vmatpush3.bf16.msra.mxu1 %v3086_v27 }
 0x177   :  { %2937 = vmatprep.subr.bf16.mxu0 %v3087_v28  ;;  %2959 = vmatprep.subr.bf16.mxu1 %v3088_v29 }
 0x17a   :  { %2938 = vmatpush3.bf16.msra.mxu0 %v3089_v30  ;;  %2960 = vmatpush3.bf16.msra.mxu1 %v3090_v31 }
 0x17b   :  { %2939 = vmatprep.subr.bf16.mxu0 %v3091_v32  ;;  %2961 = vmatprep.subr.bf16.mxu1 %v3092_v33 }
 0x17e   :  { %2940 = vmatpush3.bf16.msra.mxu0 %v3093_v34  ;;  %2962 = vmatpush3.bf16.msra.mxu1 %v3094_v35 }
 0x17f   :  { %2941 = vmatprep.subr.bf16.mxu0 %v3095_v36  ;;  %2963 = vmatprep.subr.bf16.mxu1 %v3096_v37 }
 0x182   :  { %2942 = vmatpush3.bf16.msra.mxu0 %v3097_v38  ;;  %2964 = vmatpush3.bf16.msra.mxu1 %v3098_v39 }
 0x183   :  { %2943 = vmatprep.subr.bf16.mxu0 %v3099_v40  ;;  %2965 = vmatprep.subr.bf16.mxu1 %v3100_v41 }
 0x186   :  { %2944 = vmatpush3.bf16.msra.mxu0 %v3101_v42  ;;  %2966 = vmatpush3.bf16.msra.mxu1 %v3102_v43 }
 0x187   :  { %2945 = vmatprep.subr.bf16.mxu0 %v3103_v44  ;;  %2967 = vmatprep.subr.bf16.mxu1 %v3104_v45 }
 0x18a   :  { %2946 = vmatpush3.bf16.msra.mxu0 %v3105_v0  ;;  %2968 = vmatpush3.bf16.msra.mxu1 %v3106_v46 }
 0x18b   :  { %2947 = vmatprep.subr.bf16.mxu0 %v3107_v47  ;;  %2969 = vmatprep.subr.bf16.mxu1 %v3108_v48 }
 0x18e   :  { %v1105_v53 = vpop.f32.mrb[12].mxu0  ;;  %2948 = vmatpush3.bf16.msra.mxu0 %v3109_v49  ;;  %v1146_v56 = vpop.f32.mrb[12].mxu1  ;;  %2970 = vmatpush3.bf16.msra.mxu1 %v3110_v50 }
 0x18f   :  { %v1165_v55 = vmax.f32 %v1105_v53, 0.0  ;;  %v1107_v57 = vpop.f32.mrb[13].mxu0  ;;  %2949 = vmatprep.subr.bf16.mxu0 %v3111_v51  ;;  %v1167_v59 = vmax.f32 %v1146_v56, 0.0  ;;  %v1148_v61 = vpop.f32.mrb[13].mxu1  ;;  %2971 = vmatprep.subr.bf16.mxu1 %v3112_v52 }
 0x190   :  { %v1166_v60 = vmax.f32 %v1107_v57, 0.0  ;;  %v1109_v62 = vpop.f32.mrb[14].mxu0  ;;  %v1168_v63 = vmax.f32 %v1148_v61, 0.0  ;;  %v1150_v1 = vpop.f32.mrb[14].mxu1 }
 0x191   :  { %v1110_v2 = vpop.f32.mrb[15].mxu0  ;;  %v1183_v3 = vpack.c.bf16 %v1167_v59, %v1167_v59  ;;  %v1151_v5 = vpop.f32.mrb[15].mxu1  ;;  %v1181_v6 = vpack.c.bf16 %v1165_v55, %v1165_v55 }
 0x192   :  { %v1182_v4 = vpack.c.bf16 %v1166_v60, %v1166_v60  ;;  %2950 = vmatpush3.bf16.msra.mxu0 %v3113_v54  ;;  %v1184_v7 = vpack.c.bf16 %v1168_v63, %v1168_v63  ;;  %2972 = vmatpush3.bf16.msra.mxu1 %v3114_v58 }
 0x194   :  { %2481 = vmatprep.mubr.bf16.mxu0 %v1182_v4  ;;  %2521 = vmatprep.mubr.bf16.mxu1 %v1184_v7 }
 0x195   :  { %2482 = vmatmul.mubr.bf16.vlgmr.msra.gmra.mrb[28].mxu0 %v1181_v6  ;;  %2522 = vmatmul.mubr.bf16.vlgmr.msra.gmra.mrb[28].mxu1 %v1183_v3 }
 0x208   :  { %v2819_v8 = vpop.f32.mrb[16].mxu0  ;;  %v2841_v9 = vpop.f32.mrb[16].mxu1 }
 0x209   :  { %v2820_v10 = vpop.f32.mrb[17].mxu0  ;;  %v2842_v13 = vpop.f32.mrb[17].mxu1 }
 0x20a   :  { %v2821_v12 = vadd.f32 %v2820_v10, %v2819_v8  ;;  %v2822_v14 = vpop.f32.mrb[18].mxu0  ;;  %v2843_v15 = vadd.f32 %v2842_v13, %v2841_v9  ;;  %v2844_v16 = vpop.f32.mrb[18].mxu1 }
 0x20b   :  { %v2823_v17 = vpop.f32.mrb[19].mxu0  ;;  %v2845_v18 = vpop.f32.mrb[19].mxu1 }
 0x20c   :  { %v2284_v19 = vadd.f32 %v2843_v15, %v2821_v12 }
 0x228   :  { %v2863_v20 = vpop.f32.mrb[20].mxu0  ;;  %v2885_v21 = vpop.f32.mrb[20].mxu1 }
 0x229   :  { %v2864_v22 = vpop.f32.mrb[21].mxu0  ;;  %v2886_v24 = vpop.f32.mrb[21].mxu1 }
 0x22a   :  { %v2865_v23 = vadd.f32 %v2864_v22, %v2863_v20  ;;  %v2866_v25 = vpop.f32.mrb[22].mxu0  ;;  %v2887_v11 = vadd.f32 %v2886_v24, %v2885_v21  ;;  %v2888_v26 = vpop.f32.mrb[22].mxu1 }
 0x22b   :  { %v2867_v27 = vpop.f32.mrb[23].mxu0  ;;  %v2889_v29 = vpop.f32.mrb[23].mxu1 }
 0x22c   :  { %v2324_v28 = vadd.f32 %v2865_v23, %v2284_v19 }
 0x22e   :  { %v2364_v30 = vadd.f32 %v2887_v11, %v2324_v28 }
 0x248   :  { %v2907_v31 = vpop.f32.mrb[24].mxu0  ;;  %v2929_v32 = vpop.f32.mrb[24].mxu1 }
 0x249   :  { %v2908_v33 = vpop.f32.mrb[25].mxu0  ;;  %v2930_v35 = vpop.f32.mrb[25].mxu1 }
 0x24a   :  { %v2909_v34 = vadd.f32 %v2908_v33, %v2907_v31  ;;  %v2910_v36 = vpop.f32.mrb[26].mxu0  ;;  %v2931_v37 = vadd.f32 %v2930_v35, %v2929_v32  ;;  %v2932_v38 = vpop.f32.mrb[26].mxu1 }
 0x24b   :  { %v2911_v39 = vpop.f32.mrb[27].mxu0  ;;  %v2933_v41 = vpop.f32.mrb[27].mxu1 }
 0x24c   :  { %v2404_v40 = vadd.f32 %v2909_v34, %v2364_v30 }
 0x24e   :  { %v2444_v42 = vadd.f32 %v2931_v37, %v2404_v40 }
 0x268   :  { %v2951_v43 = vpop.f32.mrb[28].mxu0  ;;  %v2973_v44 = vpop.f32.mrb[28].mxu1 }
 0x269   :  { %v2952_v45 = vpop.f32.mrb[29].mxu0  ;;  %v2974_v46 = vpop.f32.mrb[29].mxu1 }
 0x26a   :  { %v2953_v0 = vadd.f32 %v2952_v45, %v2951_v43  ;;  %v2954_v47 = vpop.f32.mrb[30].mxu0  ;;  %v2975_v48 = vadd.f32 %v2974_v46, %v2973_v44  ;;  %v2976_v49 = vpop.f32.mrb[30].mxu1 }
 0x26b   :  { %v2955_v50 = vpop.f32.mrb[31].mxu0  ;;  %v2977_v52 = vpop.f32.mrb[31].mxu1 }
 0x26c   :  { %v2484_v51 = vadd.f32 %v2953_v0, %v2444_v42 }
 0x26e   :  { %v2524_v53 = vadd.f32 %v2975_v48, %v2484_v51 }
 0x270   :  { %v2529_v54 = vmax.f32 %v2524_v53, 0.0 }
 0x272   :  { %2530 = vst [vmem:[#allocation8] sm:$0xff] %v2529_v54 }
 0x273   :  { %3192 = shalt.err (!%p3189_p0)
}
 0x274   :  { %s3193_s26 = scalar_lea.hbm %s3309_s3, 128 }
 0x275   :  { %p3194_p1 = scmp.ne.s32.totalorder %s3309_s3, %s3193_s26  ;;  %p3197_p2 = scmp.lt.u32.totalorder %s3193_s26, %s3309_s3 }
 0x277   :  { %p3199_p3 = pnand %p3197_p2, %p3194_p1 }
 0x279   :  { %3202 = shalt.err (!%p3199_p3)
}
 0x27a   :  { %2540 = dma.vmem_to_hbm [thread:$0]  %s2538_s22, 128, %s3309_s3, [#allocation4]  }
 0x27b   :  { %3207 = dma.done.wait [#allocation4], 128  }
 0x27c   :  { %3208 = vsyncadd [#allocation4], 4294967168 }
 0x27d   :  { %2544 = vsyncpa [#allocation3], 1 }
 0x27e   :  { %2545 = vsyncpa [#allocation6], 1 }
 0x27f   :  { %2546 = vsyncpa [#allocation4], 1 }

</bundles_post_ra>
